<compile_context>
chip_gen: v5e
topology: v5e:2x2
jax: 0.10.0
libtpu: 0.0.40
codegen_flags: <defaults>
</compile_context>

<pallas_src>
import jax
import jax.numpy as jnp
from jax.experimental import pallas as pl
from jax.experimental.pallas import tpu as pltpu


def self_attention_kernel(xq_ref, xk_ref, wqk_ref, bqk_ref, wv_ref, bv_ref,
                          gamma_ref, o_ref, q_scr, m_scr, l_scr, acc_scr):
    ki = pl.program_id(2)

    @pl.when(ki == 0)
    def _init():
        # Effective query for this query tile (computed once per (b, qi)):
        #   q_eff[:, i] = Wqk @ x_i + bqk     (channel-major, shape (C, TQ))
        q_scr[...] = (jnp.dot(wqk_ref[...], xq_ref[0],
                              preferred_element_type=jnp.float32)
                      + bqk_ref[...])
        m_scr[...] = jnp.full_like(m_scr, -jnp.inf)
        l_scr[...] = jnp.zeros_like(l_scr)
        acc_scr[...] = jnp.zeros_like(acc_scr)

    xk = xk_ref[0]                                             # (C, TK)

    # scores[j, i] = x_j . q_eff_i  -> (TK, TQ); softmax runs over j (axis 0).
    # dot_general contracts the channel dim of both operands directly
    # (no materialized transpose).
    s = jax.lax.dot_general(xk, q_scr[...], (((0,), (0,)), ((), ())),
                            preferred_element_type=jnp.float32)  # (TK, TQ)

    m_prev = m_scr[...]                                        # (1, TQ)
    m_new = jnp.maximum(m_prev, jnp.max(s, axis=0, keepdims=True))
    alpha = jnp.exp(m_prev - m_new)                            # (1, TQ)
    p = jnp.exp(s - m_new)                                     # (TK, TQ)

    # Value projection of this key tile: v[:, j] = Wv @ x_j + bv   (C, TK)
    v = (jnp.dot(wv_ref[...], xk, preferred_element_type=jnp.float32)
         + bv_ref[...])

    l_scr[...] = alpha * l_scr[...] + jnp.sum(p, axis=0, keepdims=True)
    acc_scr[...] = alpha * acc_scr[...] + jnp.dot(
        v, p, preferred_element_type=jnp.float32)              # (C, TQ)
    m_scr[...] = m_new

    @pl.when(ki == pl.num_programs(2) - 1)
    def _finalize():
        inv_l = pl.reciprocal(l_scr[...], approx=True)         # (1, TQ)
        gamma = gamma_ref[0, 0]                                # SMEM scalar
        o_ref[0] = (gamma * (acc_scr[...] * inv_l)
                    + xq_ref[0]).astype(o_ref.dtype)


def _pick_tile(n, t):
    if t is not None:
        return t
    for cand in (512, 256, 128):
        if n % cand == 0:
            return cand
    return n  # full extent (allowed when equal to the array dim)


def self_attention(x_nchw, wq_t, bq_t, wk_t, bk_t, wv_t, bv_t, gamma,
                   *, tq=None, tk=None):
    """Forward pass of the PyTorch SelfAttention module.

    x_nchw : (B, C, W, H) float32
    wq_t, wk_t : (C//8, C)  torch-layout 1x1-conv weights (squeezed)
    bq_t, bk_t : (C//8,)
    wv_t : (C, C), bv_t : (C,)
    gamma : (1,) scalar parameter
    """
    B, C, W, H = x_nchw.shape
    N = W * H
    tq = _pick_tile(N, tq)
    tk = _pick_tile(N, tk)
    assert N % tq == 0 and N % tk == 0, "N must be divisible by the tiles"
    assert (tq % 128 == 0 or tq == N) and (tk % 128 == 0 or tk == N), \
        "pixel tiles must be multiples of 128 (or the full pixel count)"

    # Fold the Q/K 1x1 convs into one (C, C) bilinear form so the N^2 matmuls
    # contract over C rather than C//8:
    #   scores[i, j] ~ x_i^T (Wq^T Wk) x_j + (Wk^T bq)^T x_j
    # (the bq.bk and x_i^T Wq^T bk terms are constant along the softmax axis
    #  j and cancel; the key-side bias term is kept in bqk).
    hp = jax.lax.Precision.HIGHEST
    wqk = jnp.dot(wk_t.T, wq_t, precision=hp)         # (C, C): q_eff = wqk@x + bqk
    bqk = jnp.dot(wk_t.T, bq_t, precision=hp).reshape(C, 1)  # (C, 1)
    bv = bv_t.reshape(C, 1)                            # (C, 1)
    gamma2 = jnp.asarray(gamma, jnp.float32).reshape(1, 1)

    x_flat = x_nchw.reshape(B, C, N)                   # free reshape (no transpose)

    grid = (B, N // tq, N // tk)
    flops = int(B * (4 * N * N * C + 2 * N * C * C * (1 + N // tq)))
    transcendentals = int(B * N * N)
    bytes_accessed = int(4 * B * N * C * (2 + N // tq) + 4 * 2 * C * C)

    out_flat = pl.pallas_call(
        self_attention_kernel,
        out_shape=jax.ShapeDtypeStruct((B, C, N), jnp.float32),
        grid_spec=pltpu.PrefetchScalarGridSpec(
            num_scalar_prefetch=0,
            grid=grid,
            in_specs=[
                pl.BlockSpec((1, C, tq), lambda b, qi, ki: (b, 0, qi)),  # x (queries)
                pl.BlockSpec((1, C, tk), lambda b, qi, ki: (b, 0, ki)),  # x (keys/values)
                pl.BlockSpec((C, C), lambda b, qi, ki: (0, 0)),          # Wqk (resident)
                pl.BlockSpec((C, 1), lambda b, qi, ki: (0, 0)),          # bqk
                pl.BlockSpec((C, C), lambda b, qi, ki: (0, 0)),          # Wv  (resident)
                pl.BlockSpec((C, 1), lambda b, qi, ki: (0, 0)),          # bv
                pl.BlockSpec(memory_space=pltpu.MemorySpace.SMEM),       # gamma scalar
            ],
            out_specs=pl.BlockSpec((1, C, tq), lambda b, qi, ki: (b, 0, qi)),
            scratch_shapes=[
                pltpu.VMEM((C, tq), jnp.float32),   # q_eff
                pltpu.VMEM((1, tq), jnp.float32),   # m (running max)
                pltpu.VMEM((1, tq), jnp.float32),   # l (running denom)
                pltpu.VMEM((C, tq), jnp.float32),   # acc (running numerator)
            ],
        ),
        compiler_params=pltpu.CompilerParams(
            dimension_semantics=("parallel", "parallel", "arbitrary"),
            vmem_limit_bytes=32 * 1024 * 1024,
        ),
        cost_estimate=pl.CostEstimate(
            flops=flops,
            transcendentals=transcendentals,
            bytes_accessed=bytes_accessed,
        ),
    )(x_flat, x_flat, wqk, bqk, wv_t, bv, gamma2)

    return out_flat.reshape(B, C, W, H)


def reference(x, wq_t, bq_t, wk_t, bk_t, wv_t, bv_t, gamma):
    """Pure-JAX reference mirroring the PyTorch forward exactly."""
    B, C, W, H = x.shape
    N = W * H
    xf = x.reshape(B, C, N)                                         # (B, C, N)
    q = jnp.einsum('oc,bcn->bon', wq_t, xf) + bq_t[:, None]         # (B, C8, N)
    k = jnp.einsum('oc,bcn->bon', wk_t, xf) + bk_t[:, None]         # (B, C8, N)
    v = jnp.einsum('oc,bcn->bon', wv_t, xf) + bv_t[:, None]         # (B, C, N)
    attn = jax.nn.softmax(jnp.einsum('bci,bcj->bij', q, k), axis=-1)  # (B, N, N)
    out = jnp.einsum('bcj,bij->bci', v, attn)                       # (B, C, N)
    out = jnp.asarray(gamma).reshape(()) * out + xf
    return out.reshape(B, C, W, H)


if __name__ == "__main__":
    # Small shapes consistent with the module (in_dim >= 8); N = 256 with
    # 128-pixel tiles exercises 2 query tiles x 2 key tiles per batch.
    B, C, W, H = 2, 32, 16, 16
    C8 = C // 8

    key = jax.random.PRNGKey(0)
    kx, kq, kk, kv, kbq, kbk, kbv = jax.random.split(key, 7)

    x = jax.random.normal(kx, (B, C, W, H), dtype=jnp.float32)

    # torch Conv2d(C, C_out, 1) weight is (C_out, C, 1, 1); stored squeezed.
    wq_t = 0.1 * jax.random.normal(kq, (C8, C), dtype=jnp.float32)
    wk_t = 0.1 * jax.random.normal(kk, (C8, C), dtype=jnp.float32)
    wv_t = 0.1 * jax.random.normal(kv, (C, C), dtype=jnp.float32)
    bq_t = 0.1 * jax.random.normal(kbq, (C8,), dtype=jnp.float32)
    bk_t = 0.1 * jax.random.normal(kbk, (C8,), dtype=jnp.float32)
    bv_t = 0.1 * jax.random.normal(kbv, (C,), dtype=jnp.float32)
    # nn.Parameter(torch.zeros(1)) initializes gamma = 0 (output == x); use a
    # nonzero value so the attention path is actually exercised.
    gamma = jnp.full((1,), 0.5, dtype=jnp.float32)

    out = self_attention(x, wq_t, bq_t, wk_t, bk_t, wv_t, bv_t, gamma,
                         tq=128, tk=128)
    out = jax.block_until_ready(out)

    ref = reference(x, wq_t, bq_t, wk_t, bk_t, wv_t, bv_t, gamma)
    assert out.shape == (B, C, W, H)
    # Tolerance covers the fused-Wqk reassociation, online softmax, and the
    # EUP approx reciprocal used for the softmax denominator.
    max_diff = float(jnp.max(jnp.abs(out - ref)))
    assert jnp.allclose(out, ref, atol=5e-3, rtol=5e-3), (
        f"mismatch vs reference; max abs diff = {max_diff:.3e}")

    print("KERNEL_OK")
</pallas_src>

<mosaic_0001>
module attributes {stable_mosaic.version = 11 : i64} {
  func.func @self_attention_kernel(%arg0: i32, %arg1: i32, %arg2: i32, %arg3: memref<1x32x128xf32, #tpu.memory_space<vmem>>, %arg4: memref<1x32x128xf32, #tpu.memory_space<vmem>>, %arg5: memref<32x32xf32, #tpu.memory_space<vmem>>, %arg6: memref<32x1xf32, #tpu.memory_space<vmem>>, %arg7: memref<32x32xf32, #tpu.memory_space<vmem>>, %arg8: memref<32x1xf32, #tpu.memory_space<vmem>>, %arg9: memref<1x1xf32, #tpu.memory_space<smem>>, %arg10: memref<1x32x128xf32, #tpu.memory_space<vmem>>, %arg11: memref<32x128xf32, #tpu.memory_space<vmem>>, %arg12: memref<1x128xf32, #tpu.memory_space<vmem>>, %arg13: memref<1x128xf32, #tpu.memory_space<vmem>>, %arg14: memref<32x128xf32, #tpu.memory_space<vmem>>) attributes {dimension_semantics = [#tpu.dimension_semantics<parallel>, #tpu.dimension_semantics<parallel>, #tpu.dimension_semantics<arbitrary>], iteration_bounds = array<i64: 2, 2, 2>, scalar_prefetch = 0 : i64, scratch_operands = 4 : i64, tpu.core_type = #tpu.core_type<tc>, window_params = [{transform_indices = @transform_0, window_bounds = array<i64: 1, 32, 128>}, {transform_indices = @transform_1, window_bounds = array<i64: 1, 32, 128>}, {pipeline_mode = #tpu.pipeline_mode<synchronous>, transform_indices = @transform_2, window_bounds = array<i64: 32, 32>}, {pipeline_mode = #tpu.pipeline_mode<synchronous>, transform_indices = @transform_3, window_bounds = array<i64: 32, 1>}, {pipeline_mode = #tpu.pipeline_mode<synchronous>, transform_indices = @transform_4, window_bounds = array<i64: 32, 32>}, {pipeline_mode = #tpu.pipeline_mode<synchronous>, transform_indices = @transform_5, window_bounds = array<i64: 32, 1>}, {transform_indices = @transform_6, window_bounds = array<i64: 1, 1>}, {transform_indices = @transform_7, window_bounds = array<i64: 1, 32, 128>}]} {
    %c0_i32 = arith.constant 0 : i32
    %0 = arith.cmpi eq, %arg2, %c0_i32 : i32
    %1 = arith.extui %0 : i1 to i32
    %c0_i32_0 = arith.constant 0 : i32
    %2 = arith.cmpi ne, %1, %c0_i32_0 : i32
    scf.if %2 {
      %c0_26 = arith.constant 0 : index
      %c0_27 = arith.constant 0 : index
      %37 = vector.load %arg5[%c0_26, %c0_27] : memref<32x32xf32, #tpu.memory_space<vmem>>, vector<32x32xf32>
      %c0_28 = arith.constant 0 : index
      %c0_29 = arith.constant 0 : index
      %c0_30 = arith.constant 0 : index
      %38 = vector.load %arg3[%c0_28, %c0_29, %c0_30] : memref<1x32x128xf32, #tpu.memory_space<vmem>>, vector<1x32x128xf32>
      %39 = vector.shape_cast %38 : vector<1x32x128xf32> to vector<32x128xf32>
      %cst_31 = arith.constant dense<0.000000e+00> : vector<32x128xf32>
      %40 = tpu.matmul %37, %39, %cst_31 {dimension_numbers = #tpu.dot_dimension_numbers<[1], [0], [0], [1], [0, 0, 1, 1], [], []>} : vector<32x32xf32>, vector<32x128xf32>, vector<32x128xf32> -> vector<32x128xf32>
      %c0_32 = arith.constant 0 : index
      %c0_33 = arith.constant 0 : index
      %41 = vector.load %arg6[%c0_32, %c0_33] : memref<32x1xf32, #tpu.memory_space<vmem>>, vector<32x1xf32>
      %42 = vector.broadcast %41 : vector<32x1xf32> to vector<32x128xf32>
      %43 = arith.addf %40, %42 : vector<32x128xf32>
      %c0_34 = arith.constant 0 : index
      %c0_35 = arith.constant 0 : index
      %44 = vector.load %arg11[%c0_34, %c0_35] : memref<32x128xf32, #tpu.memory_space<vmem>>, vector<32x128xf32>
      tpu.vector_store %arg11[%c0_34, %c0_35], %43 {strides = array<i32>} : memref<32x128xf32, #tpu.memory_space<vmem>>, vector<32x128xf32>,
      %cst_36 = arith.constant 0xFF800000 : f32
      %45 = vector.broadcast %cst_36 : f32 to vector<1x128xf32>
      %c0_37 = arith.constant 0 : index
      %c0_38 = arith.constant 0 : index
      %46 = vector.load %arg12[%c0_37, %c0_38] : memref<1x128xf32, #tpu.memory_space<vmem>>, vector<1x128xf32>
      tpu.vector_store %arg12[%c0_37, %c0_38], %45 {strides = array<i32>} : memref<1x128xf32, #tpu.memory_space<vmem>>, vector<1x128xf32>,
      %cst_39 = arith.constant 0.000000e+00 : f32
      %47 = vector.broadcast %cst_39 : f32 to vector<1x128xf32>
      %c0_40 = arith.constant 0 : index
      %c0_41 = arith.constant 0 : index
      %48 = vector.load %arg13[%c0_40, %c0_41] : memref<1x128xf32, #tpu.memory_space<vmem>>, vector<1x128xf32>
      tpu.vector_store %arg13[%c0_40, %c0_41], %47 {strides = array<i32>} : memref<1x128xf32, #tpu.memory_space<vmem>>, vector<1x128xf32>,
      %cst_42 = arith.constant 0.000000e+00 : f32
      %49 = vector.broadcast %cst_42 : f32 to vector<32x128xf32>
      %c0_43 = arith.constant 0 : index
      %c0_44 = arith.constant 0 : index
      %50 = vector.load %arg14[%c0_43, %c0_44] : memref<32x128xf32, #tpu.memory_space<vmem>>, vector<32x128xf32>
      tpu.vector_store %arg14[%c0_43, %c0_44], %49 {strides = array<i32>} : memref<32x128xf32, #tpu.memory_space<vmem>>, vector<32x128xf32>,
    } else {
    }
    %c0 = arith.constant 0 : index
    %c0_1 = arith.constant 0 : index
    %c0_2 = arith.constant 0 : index
    %3 = vector.load %arg4[%c0, %c0_1, %c0_2] : memref<1x32x128xf32, #tpu.memory_space<vmem>>, vector<1x32x128xf32>
    %4 = vector.shape_cast %3 : vector<1x32x128xf32> to vector<32x128xf32>
    %c0_3 = arith.constant 0 : index
    %c0_4 = arith.constant 0 : index
    %5 = vector.load %arg11[%c0_3, %c0_4] : memref<32x128xf32, #tpu.memory_space<vmem>>, vector<32x128xf32>
    %cst = arith.constant dense<0.000000e+00> : vector<128x128xf32>
    %6 = tpu.matmul %4, %5, %cst {dimension_numbers = #tpu.dot_dimension_numbers<[0], [0], [1], [1], [0, 1, 1, 1], [], []>} : vector<32x128xf32>, vector<32x128xf32>, vector<128x128xf32> -> vector<128x128xf32>
    %c0_5 = arith.constant 0 : index
    %c0_6 = arith.constant 0 : index
    %7 = vector.load %arg12[%c0_5, %c0_6] : memref<1x128xf32, #tpu.memory_space<vmem>>, vector<1x128xf32>
    %cst_7 = arith.constant dense<0xFF800000> : vector<128xf32>
    %8 = vector.multi_reduction <maximumf>, %6, %cst_7 [0] : vector<128x128xf32> to vector<128xf32>
    %9 = vector.shape_cast %8 : vector<128xf32> to vector<1x128xf32>
    %10 = arith.maximumf %7, %9 : vector<1x128xf32>
    %11 = arith.subf %7, %10 : vector<1x128xf32>
    %12 = math.exp %11 : vector<1x128xf32>
    %13 = vector.broadcast %10 : vector<1x128xf32> to vector<128x128xf32>
    %14 = arith.subf %6, %13 : vector<128x128xf32>
    %15 = math.exp %14 : vector<128x128xf32>
    %c0_8 = arith.constant 0 : index
    %c0_9 = arith.constant 0 : index
    %16 = vector.load %arg7[%c0_8, %c0_9] : memref<32x32xf32, #tpu.memory_space<vmem>>, vector<32x32xf32>
    %cst_10 = arith.constant dense<0.000000e+00> : vector<32x128xf32>
    %17 = tpu.matmul %16, %4, %cst_10 {dimension_numbers = #tpu.dot_dimension_numbers<[1], [0], [0], [1], [0, 0, 1, 1], [], []>} : vector<32x32xf32>, vector<32x128xf32>, vector<32x128xf32> -> vector<32x128xf32>
    %c0_11 = arith.constant 0 : index
    %c0_12 = arith.constant 0 : index
    %18 = vector.load %arg8[%c0_11, %c0_12] : memref<32x1xf32, #tpu.memory_space<vmem>>, vector<32x1xf32>
    %19 = vector.broadcast %18 : vector<32x1xf32> to vector<32x128xf32>
    %20 = arith.addf %17, %19 : vector<32x128xf32>
    %c0_13 = arith.constant 0 : index
    %c0_14 = arith.constant 0 : index
    %21 = vector.load %arg13[%c0_13, %c0_14] : memref<1x128xf32, #tpu.memory_space<vmem>>, vector<1x128xf32>
    %22 = arith.mulf %12, %21 : vector<1x128xf32>
    %cst_15 = arith.constant dense<0.000000e+00> : vector<128xf32>
    %23 = vector.multi_reduction <add>, %15, %cst_15 [0] : vector<128x128xf32> to vector<128xf32>
    %24 = vector.shape_cast %23 : vector<128xf32> to vector<1x128xf32>
    %25 = arith.addf %22, %24 : vector<1x128xf32>
    %c0_16 = arith.constant 0 : index
    %c0_17 = arith.constant 0 : index
    %26 = vector.load %arg13[%c0_16, %c0_17] : memref<1x128xf32, #tpu.memory_space<vmem>>, vector<1x128xf32>
    tpu.vector_store %arg13[%c0_16, %c0_17], %25 {strides = array<i32>} : memref<1x128xf32, #tpu.memory_space<vmem>>, vector<1x128xf32>,
    %c0_18 = arith.constant 0 : index
    %c0_19 = arith.constant 0 : index
    %27 = vector.load %arg14[%c0_18, %c0_19] : memref<32x128xf32, #tpu.memory_space<vmem>>, vector<32x128xf32>
    %28 = vector.broadcast %12 : vector<1x128xf32> to vector<32x128xf32>
    %29 = arith.mulf %28, %27 : vector<32x128xf32>
    %cst_20 = arith.constant dense<0.000000e+00> : vector<32x128xf32>
    %30 = tpu.matmul %20, %15, %cst_20 {dimension_numbers = #tpu.dot_dimension_numbers<[1], [0], [0], [1], [0, 0, 1, 1], [], []>} : vector<32x128xf32>, vector<128x128xf32>, vector<32x128xf32> -> vector<32x128xf32>
    %31 = arith.addf %29, %30 : vector<32x128xf32>
    %c0_21 = arith.constant 0 : index
    %c0_22 = arith.constant 0 : index
    %32 = vector.load %arg14[%c0_21, %c0_22] : memref<32x128xf32, #tpu.memory_space<vmem>>, vector<32x128xf32>
    tpu.vector_store %arg14[%c0_21, %c0_22], %31 {strides = array<i32>} : memref<32x128xf32, #tpu.memory_space<vmem>>, vector<32x128xf32>,
    %c0_23 = arith.constant 0 : index
    %c0_24 = arith.constant 0 : index
    %33 = vector.load %arg12[%c0_23, %c0_24] : memref<1x128xf32, #tpu.memory_space<vmem>>, vector<1x128xf32>
    tpu.vector_store %arg12[%c0_23, %c0_24], %10 {strides = array<i32>} : memref<1x128xf32, #tpu.memory_space<vmem>>, vector<1x128xf32>,
    %c1_i32 = arith.constant 1 : i32
    %34 = arith.cmpi eq, %arg2, %c1_i32 : i32
    %35 = arith.extui %34 : i1 to i32
    %c0_i32_25 = arith.constant 0 : i32
    %36 = arith.cmpi ne, %35, %c0_i32_25 : i32
    scf.if %36 {
      %c0_26 = arith.constant 0 : index
      %c0_27 = arith.constant 0 : index
      %37 = vector.load %arg13[%c0_26, %c0_27] : memref<1x128xf32, #tpu.memory_space<vmem>>, vector<1x128xf32>
      %38 = tpu.reciprocal %37 {approx = true} : vector<1x128xf32> -> vector<1x128xf32>
      %c0_28 = arith.constant 0 : index
      %c0_29 = arith.constant 0 : index
      %39 = memref.load %arg9[%c0_28, %c0_29] : memref<1x1xf32, #tpu.memory_space<smem>>
      %c0_30 = arith.constant 0 : index
      %c0_31 = arith.constant 0 : index
      %40 = vector.load %arg14[%c0_30, %c0_31] : memref<32x128xf32, #tpu.memory_space<vmem>>, vector<32x128xf32>
      %41 = vector.broadcast %38 : vector<1x128xf32> to vector<32x128xf32>
      %42 = arith.mulf %40, %41 : vector<32x128xf32>
      %43 = vector.broadcast %39 : f32 to vector<32x128xf32>
      %44 = arith.mulf %43, %42 : vector<32x128xf32>
      %c0_32 = arith.constant 0 : index
      %c0_33 = arith.constant 0 : index
      %c0_34 = arith.constant 0 : index
      %45 = vector.load %arg3[%c0_32, %c0_33, %c0_34] : memref<1x32x128xf32, #tpu.memory_space<vmem>>, vector<1x32x128xf32>
      %46 = vector.shape_cast %45 : vector<1x32x128xf32> to vector<32x128xf32>
      %47 = arith.addf %44, %46 : vector<32x128xf32>
      %c0_35 = arith.constant 0 : index
      %c0_36 = arith.constant 0 : index
      %c0_37 = arith.constant 0 : index
      %48 = vector.load %arg10[%c0_35, %c0_36, %c0_37] : memref<1x32x128xf32, #tpu.memory_space<vmem>>, vector<1x32x128xf32>
      %49 = vector.shape_cast %48 : vector<1x32x128xf32> to vector<32x128xf32>
      %50 = vector.shape_cast %47 : vector<32x128xf32> to vector<1x32x128xf32>
      tpu.vector_store %arg10[%c0_35, %c0_36, %c0_37], %50 {strides = array<i32>} : memref<1x32x128xf32, #tpu.memory_space<vmem>>, vector<1x32x128xf32>,
    } else {
    }
    return
  }
  func.func @transform_0(%arg0: i32, %arg1: i32, %arg2: i32) -> (i32, i32, i32) {
    %c0_i32 = arith.constant 0 : i32
    %c0_i32_0 = arith.constant 0 : i32
    return %arg0, %c0_i32, %arg1 : i32, i32, i32
  }
  func.func @transform_1(%arg0: i32, %arg1: i32, %arg2: i32) -> (i32, i32, i32) {
    %c0_i32 = arith.constant 0 : i32
    %c0_i32_0 = arith.constant 0 : i32
    return %arg0, %c0_i32, %arg2 : i32, i32, i32
  }
  func.func @transform_2(%arg0: i32, %arg1: i32, %arg2: i32) -> (i32, i32) {
    %c0_i32 = arith.constant 0 : i32
    %c0_i32_0 = arith.constant 0 : i32
    %c0_i32_1 = arith.constant 0 : i32
    return %c0_i32, %c0_i32_0 : i32, i32
  }
  func.func @transform_3(%arg0: i32, %arg1: i32, %arg2: i32) -> (i32, i32) {
    %c0_i32 = arith.constant 0 : i32
    %c0_i32_0 = arith.constant 0 : i32
    %c0_i32_1 = arith.constant 0 : i32
    return %c0_i32, %c0_i32_0 : i32, i32
  }
  func.func @transform_4(%arg0: i32, %arg1: i32, %arg2: i32) -> (i32, i32) {
    %c0_i32 = arith.constant 0 : i32
    %c0_i32_0 = arith.constant 0 : i32
    %c0_i32_1 = arith.constant 0 : i32
    return %c0_i32, %c0_i32_0 : i32, i32
  }
  func.func @transform_5(%arg0: i32, %arg1: i32, %arg2: i32) -> (i32, i32) {
    %c0_i32 = arith.constant 0 : i32
    %c0_i32_0 = arith.constant 0 : i32
    %c0_i32_1 = arith.constant 0 : i32
    return %c0_i32, %c0_i32_0 : i32, i32
  }
  func.func @transform_6(%arg0: i32, %arg1: i32, %arg2: i32) -> (i32, i32) {
    %c0_i32 = arith.constant 0 : i32
    %c0_i32_0 = arith.constant 0 : i32
    %c0_i32_1 = arith.constant 0 : i32
    return %c0_i32, %c0_i32_0 : i32, i32
  }
  func.func @transform_7(%arg0: i32, %arg1: i32, %arg2: i32) -> (i32, i32, i32) {
    %c0_i32 = arith.constant 0 : i32
    %c0_i32_0 = arith.constant 0 : i32
    return %arg0, %c0_i32, %arg1 : i32, i32, i32
  }
}

</mosaic_0001>

<bundles_post_ra>
// kernel: tpu_custom_call.1
= control target key start
LH: loop header
LB: loop body
LE: loop exit
PB: predicated region body
PF: predicated region fallthrough
CT: control target
= control target key end

     0   :  { %s1911_s0 = inlined_call_operand.hbm [shape: f32[2,32,256], index: 0, kind: input, shape index: {}]   ;;  %s1912_s1 = inlined_call_operand.hbm [shape: f32[2,32,256], index: 1, kind: input, shape index: {}]   ;;  %s1913_s2 = inlined_call_operand.vmem [shape: f32[32,32], index: 2, kind: input, shape index: {}]   ;;  %s1914_s3 = inlined_call_operand.vmem [shape: f32[32,1], index: 3, kind: input, shape index: {}]   ;;  %s1915_s4 = inlined_call_operand.vmem [shape: f32[32,32], index: 4, kind: input, shape index: {}]   ;;  %s1916_s5 = inlined_call_operand.vmem [shape: f32[32,1], index: 5, kind: input, shape index: {}]   ;;  %s1917_s6 = inlined_call_operand.<no memory space> [shape: f32[1,1], index: 6, kind: input, shape index: {}]   ;;  %s1918_s7 = inlined_call_operand.hbm [shape: f32[2,32,256], index: 7, kind: output, shape index: {}]  }
   0x1   :  { %1937 = sst [smem:[#allocation25_spill]] %s1911_s0 }
   0x2   :  { %1938 = sst [smem:[#allocation26_spill]] %s1913_s2 }
   0x3   :  { %1939 = sst [smem:[#allocation27_spill]] %s1914_s3 }
   0x4   :  { %1940 = sst [smem:[#allocation28_spill]] %s1915_s4 }
   0x5   :  { %1941 = sst [smem:[#allocation29_spill]] %s1916_s5 }
   0x6   :  { %1942 = sst [smem:[#allocation30_spill]] %s1918_s7 }
   0x7   :  { %12 = sst [smem:[#allocation6]] %s1917_s6 }
   0x8   :  { %13 = vsyncpa [#allocation8], 0 }
   0x9   :  { %15 = vsyncpa [#allocation8 + $0x1], 0 }
   0xa   :  { %16 = vsyncpa [#allocation11], 0 }
   0xb   :  { %18 = vsyncpa [#allocation11 + $0x1], 0 }
   0xc   :  { %19 = vsyncpa [#allocation9], 0 }
   0xd   :  { %21 = vsyncpa [#allocation9 + $0x1], 0  ;;  %s1499_s26 = smov 0   ;;  %s1501_s27 = smov 0  }
   0xe   :  { %s1503_s28 = smov 0   ;;  %s1505_s29 = smov 0  }
   0xf   :  { %s1507_s30 = smov 0   ;;  %s1509_s8 = smov 0  }
  0x10   :  { %s1511_s9 = smov 0   ;;  %s1513_s6 = smov 0  }
  0x11   :  { %s1515_s10 = smov 0   ;;  %s1517_s11 = smov 0  }
  0x12   :  { %s1519_s12 = smov 0   ;;  %s1521_s13 = smov 0  }
  0x13   :  { %s1523_s14 = smov 0  }
  0x14 LB: > { %1943 = sst [smem:[#allocation16_spill]] %s1408_s29  ;;  %s1002_s15 = sadd.s32 4294967295, %s1444_s14   ;;  %s1444_s14 = sphi %s1523_s14, %s27_s14   ;;  %s1440_s13 = sphi %s1521_s13, %s1992_s13   ;;  %s1436_s12 = sphi %s1519_s12, %s1983_s12   ;;  %s1432_s11 = sphi %s1517_s11, %s1982_s11   ;;  %s1428_s10 = sphi %s1515_s10, %s1991_s10   ;;  %s1424_s6 = sphi %s1513_s6, %s1981_s6   ;;  %s1420_s9 = sphi %s1511_s9, %s1980_s9   ;;  %s1416_s8 = sphi %s1509_s8, %s1990_s8   ;;  %s1412_s30 = sphi %s1507_s30, %s1989_s30   ;;  %s1408_s29 = sphi %s1505_s29, %s1988_s29   ;;  %s1404_s28 = sphi %s1503_s28, %s1987_s28   ;;  %s1400_s27 = sphi %s1501_s27, %s1986_s27   ;;  %s1396_s26 = sphi %s1499_s26, %s1985_s26  }
  0x15   : > { %1944 = sst [smem:[#allocation17_spill]] %s1424_s6  ;;  %s1003_s16 = sadd.s32 4294967294, %s1444_s14  }
  0x16   : > { %1945 = sst [smem:[#allocation18_spill]] %s1428_s10  ;;  %p62_p0 = scmp.ne.s32.totalorder %s1416_s8, %s1412_s30 }
  0x17   : > { %1946 = sst [smem:[#allocation19_spill]] %s1432_s11  ;;  %p63_p1 = scmp.eq.s32.totalorder %s1444_s14, 0 }
  0x18   : > { %1947 = sst [smem:[#allocation20_spill]] %s1436_s12  ;;  %p68_p2 = scmp.ne.s32.totalorder %s1412_s30, %s1408_s29 }
  0x19   : > { %p1573_p3 = scmp.eq.s32.totalorder %s1002_s15, 0  ;;  %p227_p4 = scmp.eq.s32.totalorder %s1002_s15, 7 }
  0x1a   : > { %p1579_p5 = por %p63_p1, %p62_p0  ;;  %p233_p6 = scmp.eq.s32.totalorder %s1003_s16, 7 }
  0x1b   : > { %p1585_p7 = por %p1573_p3, %p68_p2  ;;  %p1589_p8 = por %p227_p4, %p62_p0 }
  0x1c   : > { %p1593_p9 = por %p233_p6, %p68_p2  ;;  %p1084_p10 = scmp.lt.s32.totalorder %s1444_s14, 8 }
  0x1d   : > { %s1951_s22 = scalar_select %p1589_p8, 1, 0 }
  0x1e   : > { %s1953_s23 = scalar_select %p1593_p9, 1, 0 }
  0x1f   : > { %1952 = sst [smem:[#allocation21_spill]] %s1951_s22  ;;  %s268_s24 = sand.u32 1, %s1416_s8  }
  0x20   : > { %1954 = sst [smem:[#allocation22_spill]] %s1953_s23  ;;  %s1006_s25 = sshll.u32 %s268_s24, 5 }
  0x21   : > { %s1924_s15 = sshll.u32 %s1440_s13, 3  ;;  %s272_s18 = scalar_lea.vmem [#allocation7], %s1006_s25 }
  0x22   : > { %s276_s16 = sadd.s32 %s1436_s12, %s1924_s15  ;;  %s281_s17 = sshll.u32 %s272_s18, 4  ;;  %s282_s17 = int_to_ptr.vmem [resolvable:$true] %s281_s17 }
  0x23   : > { %s1008_s29 = sshll.u32 %s276_s16, 3  ;;  %s1955_s0 = sld [smem:[#allocation25_spill]] }
  0x24   : > { %p1074_p11 = pnand %p1084_p10, %p1579_p5  ;;  %s269_s25 = scalar_lea.sflag [#allocation8], %s268_s24 }
  0x25   : > { %s1925_s18 = smov 256   ;;  %s1926_s16 = smov 128  }
  0x26   : > { %s1927_s15 = smov 8   ;;  %p1012_p12 = scmp.ge.s32.totalorder %s1444_s14, 1 }
  0x27   : > { %p312_p13 = scmp.lt.s32.totalorder %s1444_s14, 9  ;;  %p96_p4 = scmp.ne.s32.totalorder %s1400_s27, %s1396_s26 }
  0x28   : > { %p90_p5 = scmp.ne.s32.totalorder %s1404_s28, %s1400_s27  ;;  %s291_s24 = sand.u32 1, %s1404_s28  }
  0x29   : > { %s278_s6 = scalar_lea.hbm %s1955_s0, %s1008_s29  ;;  %p1616_p0 = pnand %p1012_p12, %p312_p13 }
  0x2a   : > { %s279_s23 = sshll.u32 %s278_s6, 4  ;;  %s39_s6 = sadd.s32 1, %s1432_s11  ;;  %s280_s23 = int_to_ptr.hbm [resolvable:$true] %s279_s23 }
  0x2b   : > { %1076 = dma.hbm_to_vmem [thread:$0]  (!%p1074_p11), %s280_s23, 512, %s282_s17, %s269_s25, %s1925_s18, %s1926_s16, %s1927_s15  }
  0x2c   : > { %p40_p2 = scmp.ge.s32.totalorder %s39_s6, 2  ;;  %s1958_s17 = sadd.s32 1, %s1436_s12 }
  0x2d   : > { %p1635_p11 = por %p96_p4, %p1573_p3  ;;  %s1960_s25 = sshll.u32 %s1440_s13, 3 }
  0x2e   : > { %s1994_s6 = smov (%p40_p2, %s39_s6), 0  ;;  %s1996_s17 = smov (!%p40_p2, %s1958_s17), %s1436_s12 }
  0x2f   : > { %1957 = sst [smem:[#allocation23_spill]] %s1994_s6  ;;  %s79_s22 = ssub.s32 %s1432_s11, %s1994_s6 }
  0x30   : > { %p44_p6 = scmp.ge.s32.totalorder %s1996_s17, 2  ;;  %s299_s18 = sadd.s32 %s1432_s11, %s1960_s25 }
  0x31   : > { %s1962_s26 = sadd.s32 1, %s1440_s13  ;;  %p1652_p12 = por %p90_p5, %p63_p1 }
  0x32   : > { %s1998_s17 = smov (%p44_p6, %s1996_s17), 0  ;;  %s2000_s26 = smov (!%p44_p6, %s1962_s26), %s1440_s13 }
  0x33   : > { %1961 = sst [smem:[#allocation24_spill]] %s1998_s17  ;;  %s51_s16 = ssub.s32 %s1436_s12, %s1998_s17 }
  0x34   : > { %p48_p3 = scmp.ge.s32.totalorder %s2000_s26, 2  ;;  %s1009_s19 = sshll.u32 %s291_s24, 5 }
  0x35   : > { %s1011_s25 = sshll.u32 %s299_s18, 3  ;;  %s295_s10 = scalar_lea.vmem [#allocation10], %s1009_s19 }
  0x36   : > { %s2002_s26 = smov (%p48_p3, %s2000_s26), 0  ;;  %s301_s0 = scalar_lea.hbm %s1912_s1, %s1011_s25 }
  0x37   : > { %s50_s17 = ssub.s32 %s1440_s13, %s2002_s26  ;;  %s302_s6 = sshll.u32 %s301_s0, 4  ;;  %s303_s6 = int_to_ptr.hbm [resolvable:$true] %s302_s6 }
  0x38   : > { %s52_s12 = sor.u32 %s51_s16, %s50_s17  ;;  %s80_s11 = sor.u32 %s79_s22, %s50_s17 }
  0x39   : > { %p53_p1 = scmp.eq.s32.totalorder %s52_s12, 0  ;;  %p81_p13 = scmp.eq.s32.totalorder %s80_s11, 0 }
  0x3a   : > { %s304_s5 = sshll.u32 %s295_s10, 4  ;;  %s1964_s4 = sadd.s32 1, %s1416_s8  ;;  %s305_s5 = int_to_ptr.vmem [resolvable:$true] %s304_s5 }
  0x3b   : > { %s1666_s3 = scalar_select %p53_p1, %s1416_s8, %s1964_s4  }
  0x3c   : > { %s1965_s18 = sadd.s32 1, %s1404_s28  ;;  %p1077_p2 = pnand %p1084_p10, %p1652_p12 }
  0x3d   : > { %s1671_s2 = scalar_select %p81_p13, %s1404_s28, %s1965_s18  }
  0x3e   : > { %s292_s7 = scalar_lea.sflag [#allocation11], %s291_s24  ;;  %s1966_s20 = smov 8  }
  0x3f   : > { %s1967_s0 = smov 128   ;;  %s1968_s16 = smov 256  }
  0x40   : > { %1079 = dma.hbm_to_vmem [thread:$0]  (!%p1077_p2), %s303_s6, 512, %s305_s5, %s292_s7, %s1968_s16, %s1967_s0, %s1966_s20  }
  0x41   : > { %316 = sbr.rel (%p1616_p0) target bundleno = 916 (0x394), region = 48  ;;  %s1683_s10 = sand.u32 (!%p1616_p0), 1, %s1412_s30  }
  0x42   : > { %s1013_s4 = sshll.u32 (!%p1616_p0), %s1683_s10, 5  ;;  %s319_s11 = scalar_lea.sflag (!%p1616_p0), [#allocation8], %s1683_s10 }
  0x43   : > { %s1687_s12 = scalar_lea.vmem (!%p1616_p0), [#allocation7], %s1013_s4 }
  0x46   : > { %1383 = dma.done.wait (%p1585_p7), %s319_s11, 512  }
  0x47   : > { %1385 = vsyncadd (%p1585_p7), %s319_s11, 4294966784  ;;  %s328_s5 = sand.u32 1, %s1400_s27  }
  0x48   : > { %s1014_s15 = sshll.u32 %s328_s5, 5  ;;  %s329_s29 = scalar_lea.sflag [#allocation11], %s328_s5 }
  0x49   : > { %s1694_s6 = scalar_lea.vmem [#allocation10], %s1014_s15 }
  0x4a   : > { %1387 = dma.done.wait (%p1635_p11), %s329_s29, 512  }
  0x4b   : > { %1389 = vsyncadd (%p1635_p11), %s329_s29, 4294966784  ;;  %s1700_s17 = scalar_lea.vmem [#allocation12], %s1013_s4  ;;  %p1016_p10 = scmp.ne.s32.totalorder %s1420_s9, 0 }
  0x4c   : > { %s1969_s23 = sld [smem:[#allocation26_spill]] (!%p1016_p10) }
  0x4d   : > { %372 = sbr.rel (%p1016_p10) target bundleno = 229 (0xe5), region = 60  ;;  %s1970_s4 = sld [smem:[#allocation27_spill]] (!%p1016_p10) }
  0x52   : > { %v380_v0 = vld [vmem:[%s1687_s12 + $0x18] sm:$0xff]  ;;  %v379_v1 = vld [vmem:[%s1687_s12 + $0x10] sm:$0xff]  ;;  %v378_v2 = vld [vmem:[%s1687_s12 + $0x8] sm:$0xff]  ;;  %vm405_vm0 = vcmask 261120   ;;  %v1449_v8 = vmov 0   ;;  %v1450_v13 = vmov -inf  }
  0x53   : > { %430 = vmatpush.msra.mxu0 %v380_v0  ;;  %1047 = vmatpush.msra.mxu1 %v380_v0  ;;  %v377_v3 = vld [vmem:[%s1687_s12] sm:$0xff]  ;;  %v375_v6 = vld [vmem:[%s1969_s23 + $0x10] sm:$0xff]  ;;  %v376_v7 = vld [vmem:[%s1969_s23 + $0x18] sm:$0xff]  ;;  %451 = vst [vmem:[#allocation3] sm:$0x1] %v1450_v13  ;;  %v1451_v14 = vmov 0.0  }
  0x54   : > { %1048 = vmatpush.msra.mxu2 %v380_v0  ;;  %1049 = vmatpush.msra.mxu3 %v380_v0  ;;  %v373_v4 = vld [vmem:[%s1969_s23] sm:$0xff]  ;;  %v374_v5 = vld [vmem:[%s1969_s23 + $0x8] sm:$0xff]  ;;  %v383_v9 = vld [vmem:[%s1970_s4 + $0x10] sm:$0xff]  ;;  %452 = vst [vmem:[#allocation4] sm:$0x1] %v1451_v14 }
  0x55   : > { %431 = vmatpush.msra.mxu0 %v379_v1  ;;  %1050 = vmatpush.msra.mxu1 %v379_v1  ;;  %v381_v10 = vld [vmem:[%s1970_s4] sm:$0xff]  ;;  %v384_v11 = vld [vmem:[%s1970_s4 + $0x18] sm:$0xff]  ;;  %v382_v12 = vld [vmem:[%s1970_s4 + $0x8] sm:$0xff]  ;;  %453 = vst [vmem:[#allocation5] sm:$0xff] %v1451_v14 }
  0x56   : > { %1051 = vmatpush.msra.mxu2 %v379_v1  ;;  %1052 = vmatpush.msra.mxu3 %v379_v1  ;;  %454 = vst [vmem:[#allocation5 + $0x18] sm:$0xff] %v1451_v14 }
  0x57   : > { %432 = vmatpush.msra.mxu0 %v378_v2  ;;  %1053 = vmatpush.msra.mxu1 %v378_v2  ;;  %455 = vst [vmem:[#allocation5 + $0x8] sm:$0xff] %v1451_v14 }
  0x58   : > { %1054 = vmatpush.msra.mxu2 %v378_v2  ;;  %1055 = vmatpush.msra.mxu3 %v378_v2  ;;  %456 = vst [vmem:[#allocation5 + $0x10] sm:$0xff] %v1451_v14 }
  0x59   : > { %433 = vmatpush.msra.mxu0 %v377_v3  ;;  %1056 = vmatpush.msra.mxu1 %v377_v3 }
  0x5a   : > { %1057 = vmatpush.msra.mxu2 %v377_v3  ;;  %1058 = vmatpush.msra.mxu3 %v377_v3 }
  0x5b   : > { %1202 = vset.pattern.permute.xlu1 %v1449_v8  ;;  %1201 = vset.pattern.permute.xlu0 %v1449_v8 }
  0x5c   : > { %1017 = vmatmul.msk.f32.vlgmr.msra.gmra.mxu0 %vm405_vm0, %v373_v4  ;;  %1018 = vmatmul.msk.f32.vlgmr.msra.gmra.mxu1 %vm405_vm0, %v374_v5 }
  0x5d   : > { %1019 = vmatmul.msk.f32.vlgmr.msra.gmra.mxu2 %vm405_vm0, %v375_v6  ;;  %1020 = vmatmul.msk.f32.vlgmr.msra.gmra.mxu3 %vm405_vm0, %v376_v7 }
  0x5e   : > { %397 = vperm.xlu1 %1202, %v383_v9   ;;  %387 = vperm.xlu0 %1201, %v381_v10  }
  0x66   : > { %402 = vperm.xlu1 %1202, %v384_v11   ;;  %392 = vperm.xlu0 %1201, %v382_v12  }
  0xd0   : > { %v388_v15 = vpop.permute.xlu0 %387  ;;  %v398_v16 = vpop.permute.xlu1 %397 }
  0xd8   : > { %v393_v17 = vpop.permute.xlu0 %392  ;;  %v403_v22 = vpop.permute.xlu1 %402 }
  0xd9   : > { %v435_v18 = vpop.f32.mrf.mxu0  ;;  %v438_v19 = vpop.f32.mrf.mxu1 }
  0xda   : > { %v436_v20 = vadd.f32 %v435_v18, %v388_v15  ;;  %v439_v21 = vadd.f32 %v438_v19, %v393_v17 }
  0xdc   : > { %447 = vst [vmem:[#allocation2 + $0x10] sm:$0xff] %v436_v20 }
  0xdd   : > { %448 = vst [vmem:[#allocation2] sm:$0xff] %v439_v21 }
  0xe0   : > { %v441_v23 = vpop.f32.mrf.mxu2  ;;  %v444_v24 = vpop.f32.mrf.mxu3 }
  0xe1   : > { %v442_v25 = vadd.f32 %v441_v23, %v398_v16  ;;  %v445_v26 = vadd.f32 %v444_v24, %v403_v22 }
  0xe3   : > { %449 = vst [vmem:[#allocation2 + $0x18] sm:$0xff] %v442_v25 }
  0xe4   : > { %450 = vst [vmem:[#allocation2 + $0x8] sm:$0xff] %v445_v26 }
  0xe5 PF: > { %v457_v27 = vld [vmem:[%s1694_s6] sm:$0xff]  ;;  %v461_v31 = vld [vmem:[#allocation2 + $0x10] sm:$0xff]  ;;  %v460_v33 = vld [vmem:[%s1694_s6 + $0x18] sm:$0xff]  ;;  %vm497_vm1 = vcmask 261120   ;;  %s1971_s19 = sld [smem:[#allocation28_spill]]  ;;  %v1452_v53 = vmov 0  }
  0xe6   : > { %465 = vxpose.xlu0.b32.start [1/4] (short) %v457_v27, 128  ;;  %v462_v30 = vld [vmem:[#allocation2] sm:$0xff]  ;;  %v458_v32 = vld [vmem:[%s1694_s6 + $0x8] sm:$0xff]  ;;  %v459_v34 = vld [vmem:[%s1694_s6 + $0x10] sm:$0xff]  ;;  %1203 = vset.pattern.permute.xlu1 %v1452_v53  ;;  %s1972_s0 = sld [smem:[#allocation29_spill]]  ;;  %p1041_p7 = scmp.ne.s32.totalorder %s1420_s9, 1 }
  0xe7   : > { %1204 = vset.pattern.permute.xlu2 %v1452_v53  ;;  %s837_s18 = sld [smem:[#allocation6]] (!%p1041_p7) }
  0xea   : > { %v463_v29 = vld [vmem:[#allocation2 + $0x18] sm:$0xff] }
  0xeb   : > { %v464_v28 = vld [vmem:[#allocation2 + $0x8] sm:$0xff]  ;;  %v688_v51 = vld [vmem:[%s1971_s19] sm:$0xff]  ;;  %v690_v55 = vld [vmem:[%s1971_s19 + $0x10] sm:$0xff] }
  0xec   : > { %558 = vmatpush.msra.mxu0 %v464_v28  ;;  %1059 = vmatpush.msra.mxu1 %v464_v28  ;;  %v689_v52 = vld [vmem:[%s1971_s19 + $0x8] sm:$0xff]  ;;  %v692_v54 = vld [vmem:[%s1972_s0] sm:$0xff]  ;;  %v691_v57 = vld [vmem:[%s1971_s19 + $0x18] sm:$0xff] }
  0xed   : > { %1060 = vmatpush.msra.mxu3 %v464_v28  ;;  %698 = vperm.xlu1 %1203, %v692_v54   ;;  %v693_v56 = vld [vmem:[%s1972_s0 + $0x8] sm:$0xff]  ;;  %v694_v60 = vld [vmem:[%s1972_s0 + $0x10] sm:$0xff]  ;;  %v695_v63 = vld [vmem:[%s1972_s0 + $0x18] sm:$0xff] }
  0xee   : > { %559 = vmatpush.msra.mxu0 %v463_v29  ;;  %1061 = vmatpush.msra.mxu1 %v463_v29 }
  0xef   : > { %1062 = vmatpush.msra.mxu3 %v463_v29  ;;  %466 = vxpose.xlu0.b32.cont [2/4] (short) %v458_v32, 128 }
  0xf0   : > { %560 = vmatpush.msra.mxu0 %v462_v30  ;;  %1063 = vmatpush.msra.mxu1 %v462_v30 }
  0xf1   : > { %1064 = vmatpush.msra.mxu3 %v462_v30  ;;  %708 = vperm.xlu2 %1204, %v694_v60  }
  0xf2   : > { %561 = vmatpush.msra.mxu0 %v461_v31  ;;  %1065 = vmatpush.msra.mxu1 %v461_v31 }
  0xf3   : > { %1066 = vmatpush.msra.mxu3 %v461_v31 }
  0xf4   : > { %740 = vmatpush.msrb.mxu1 %v460_v33 }
  0xf5   : > { %703 = vperm.xlu1 %1203, %v693_v56  }
  0xf6   : > { %741 = vmatpush.msrb.mxu1 %v459_v34 }
  0xf7   : > { %467 = vxpose.xlu0.b32.cont [3/4] (short) %v459_v34, 128 }
  0xf8   : > { %742 = vmatpush.msrb.mxu1 %v458_v32  ;;  %v1806_v32 = vld [vmem:[#allocation3] sm:$0x1] }
  0xf9   : > { %713 = vperm.xlu2 %1204, %v695_v63  }
  0xfa   : > { %743 = vmatpush.msrb.mxu1 %v457_v27 }
  0xff   : > { %468 = vxpose.xlu0.b32.end [4/4] (short) %v460_v33, 128 }
 0x166   : > { %1205 = vset.pattern.permute.xlu0 %v1452_v53 }
 0x18b   : > { %v481_v35 = vpop.trf.xlu0 }
 0x18c   : > { %1021 = vmatmul.msk.f32.vlgmr.msra.gmra.mxu0 %vm497_vm1, %v481_v35 }
 0x193   : > { %v482_v36 = vpop.trf.xlu0 }
 0x194   : > { %1022 = vmatmul.msk.f32.gmra.mxu0 %vm497_vm1, %v482_v36 }
 0x19b   : > { %v483_v37 = vpop.trf.xlu0 }
 0x19c   : > { %1023 = vmatmul.msk.f32.gmra.mxu0 %vm497_vm1, %v483_v37 }
 0x1a3   : > { %v484_v38 = vpop.trf.xlu0 }
 0x1a4   : > { %1024 = vmatmul.msk.f32.gmra.mxu0 %vm497_vm1, %v484_v38 }
 0x1ab   : > { %v485_v39 = vpop.trf.xlu0 }
 0x1ac   : > { %1025 = vmatmul.msk.f32.gmra.mxu0 %vm497_vm1, %v485_v39 }
 0x1b3   : > { %v486_v40 = vpop.trf.xlu0 }
 0x1b4   : > { %1026 = vmatmul.msk.f32.gmra.mxu0 %vm497_vm1, %v486_v40 }
 0x1bb   : > { %v487_v41 = vpop.trf.xlu0 }
 0x1bc   : > { %1027 = vmatmul.msk.f32.gmra.mxu0 %vm497_vm1, %v487_v41 }
 0x1c3   : > { %v488_v42 = vpop.trf.xlu0 }
 0x1c4   : > { %1028 = vmatmul.msk.f32.vlgmr.msra.gmra.mxu1 %vm497_vm1, %v488_v42 }
 0x1cb   : > { %v489_v43 = vpop.trf.xlu0 }
 0x1cc   : > { %1029 = vmatmul.msk.f32.gmra.mxu1 %vm497_vm1, %v489_v43 }
 0x1d3   : > { %v490_v44 = vpop.trf.xlu0 }
 0x1d4   : > { %1030 = vmatmul.msk.f32.vlgmr.msra.gmra.mxu3 %vm497_vm1, %v490_v44  ;;  %1037 = vmatmul.msk.f32.vlgmr.msrb.gmra.mxu1 %vm497_vm1, %v688_v51 }
 0x1db   : > { %v491_v45 = vpop.trf.xlu0 }
 0x1dc   : > { %1031 = vmatmul.msk.f32.gmra.mxu3 %vm497_vm1, %v491_v45  ;;  %1038 = vmatmul.msk.f32.gmra.mxu1 %vm497_vm1, %v689_v52 }
 0x1e3   : > { %v492_v46 = vpop.trf.xlu0 }
 0x1e4   : > { %1032 = vmatmul.msk.f32.gmra.mxu3 %vm497_vm1, %v492_v46  ;;  %1039 = vmatmul.msk.f32.gmra.mxu1 %vm497_vm1, %v690_v55 }
 0x1eb   : > { %v493_v47 = vpop.trf.xlu0 }
 0x1ec   : > { %1033 = vmatmul.msk.f32.gmra.mxu3 %vm497_vm1, %v493_v47  ;;  %1040 = vmatmul.msk.f32.gmra.mxu1 %vm497_vm1, %v691_v57 }
 0x1f3   : > { %v494_v48 = vpop.trf.xlu0 }
 0x1f4   : > { %1034 = vmatmul.msk.f32.gmra.mxu3 %vm497_vm1, %v494_v48 }
 0x1fb   : > { %v495_v49 = vpop.trf.xlu0 }
 0x1fc   : > { %1035 = vmatmul.msk.f32.gmra.mxu3 %vm497_vm1, %v495_v49 }
 0x203   : > { %v496_v50 = vpop.trf.xlu0 }
 0x204   : > { %1036 = vmatmul.msk.f32.gmra.mxu3 %vm497_vm1, %v496_v50 }
 0x209   : > { %v1773_v58 = vpop.f32.mrf.mxu0 }
 0x211   : > { %v1775_v59 = vpop.f32.mrf.mxu0 }
 0x219   : > { %v1782_v62 = vpop.f32.mrf.mxu0 }
 0x221   : > { %v1787_v1 = vpop.f32.mrf.mxu0 }
 0x229   : > { %v1789_v3 = vpop.f32.mrf.mxu0 }
 0x22a   : > { %v612_v12 = vmax.f32 %v1773_v58, %v1789_v3 }
 0x231   : > { %v1791_v5 = vpop.f32.mrf.mxu0 }
 0x232   : > { %v613_v10 = vmax.f32 %v1775_v59, %v1791_v5 }
 0x239   : > { %v1795_v9 = vpop.f32.mrf.mxu0 }
 0x23a   : > { %v614_v13 = vmax.f32 %v1782_v62, %v1795_v9 }
 0x241   : > { %v1793_v7 = vpop.f32.mrf.mxu1 }
 0x242   : > { %v615_v14 = vmax.f32 %v1787_v1, %v1793_v7 }
 0x249   : > { %v587_v11 = vpop.f32.mrf.mxu1 }
 0x24a   : > { %v616_v16 = vmax.f32 %v612_v12, %v587_v11 }
 0x257   : > { %v1780_v61 = vpop.f32.mrf.mxu3 }
 0x258   : > { %v617_v15 = vmax.f32 %v613_v10, %v1780_v61 }
 0x25f   : > { %v593_v0 = vpop.f32.mrf.mxu3 }
 0x260   : > { %v618_v17 = vmax.f32 %v614_v13, %v593_v0 }
 0x267   : > { %v596_v2 = vpop.f32.mrf.mxu3 }
 0x268   : > { %v619_v18 = vmax.f32 %v615_v14, %v596_v2 }
 0x26f   : > { %v599_v4 = vpop.f32.mrf.mxu3 }
 0x270   : > { %v620_v21 = vmax.f32 %v616_v16, %v599_v4 }
 0x277   : > { %v602_v6 = vpop.f32.mrf.mxu3 }
 0x278   : > { %v621_v19 = vmax.f32 %v617_v15, %v602_v6 }
 0x27a   : > { %v624_v24 = vmax.f32 %v620_v21, %v621_v19 }
 0x27f   : > { %v605_v8 = vpop.f32.mrf.mxu3 }
 0x280   : > { %v622_v22 = vmax.f32 %v618_v17, %v605_v8 }
 0x287   : > { %v608_v20 = vpop.f32.mrf.mxu3 }
 0x288   : > { %v623_v23 = vmax.f32 %v619_v18, %v608_v20 }
 0x28a   : > { %v625_v25 = vmax.f32 %v622_v22, %v623_v23  ;;  %v745_v23 = vpop.f32.mrf.mxu1 }
 0x28c   : > { %v626_v26 = vmax.f32 %v624_v24, %v625_v25 }
 0x28e   : > { %v627_v27 = vrot.slane %v626_v26, 4 }
 0x290   : > { %v628_v28 = vmax.f32 %v626_v26, %v627_v27  ;;  %v699_v26 = vpop.permute.xlu1 %698 }
 0x292   : > { %v629_v29 = vrot.slane %v628_v28, 2 }
 0x294   : > { %v630_v30 = vmax.f32 %v628_v28, %v629_v29  ;;  %v746_v28 = vadd.f32 %v745_v23, %v699_v26 }
 0x296   : > { %v631_v31 = vrot.slane %v630_v30, 1 }
 0x298   : > { %v632_v33 = vmax.f32 %v630_v30, %v631_v31  ;;  %v748_v31 = vpop.f32.mrf.mxu1 }
 0x29a   : > { %v1809_v34 = vmax.f32 %v1806_v32, %v632_v33 }
 0x29c   : > { %v638_v35 = vperm.slane %v1809_v34, 0  ;;  %830 = vst [vmem:[#allocation3] sm:$0x1] %v1809_v34 }
 0x29e   : > { %v655_v36 = vsub.f32 %v608_v20, %v638_v35  ;;  %v654_v37 = vsub.f32 %v605_v8, %v638_v35  ;;  %v653_v38 = vsub.f32 %v602_v6, %v638_v35  ;;  %v652_v41 = vsub.f32 %v599_v4, %v638_v35 }
 0x29f   : > { %v651_v43 = vsub.f32 %v596_v2, %v638_v35  ;;  %v650_v45 = vsub.f32 %v593_v0, %v638_v35  ;;  %v649_v47 = vsub.f32 %v1780_v61, %v638_v35  ;;  %v648_v48 = vsub.f32 %v587_v11, %v638_v35 }
 0x2a0   : > { %v686_v39 = vmul.f32 1.442695, %v655_v36  ;;  %v684_v40 = vmul.f32 1.442695, %v654_v37  ;;  %v682_v42 = vmul.f32 1.442695, %v653_v38  ;;  %v641_v51 = vsub.f32 %v1775_v59, %v638_v35  ;;  %v704_v36 = vpop.permute.xlu1 %703 }
 0x2a1   : > { %v680_v44 = vmul.f32 1.442695, %v652_v41  ;;  %v678_v46 = vmul.f32 1.442695, %v651_v43  ;;  %v676_v50 = vmul.f32 1.442695, %v650_v45  ;;  %v640_v52 = vsub.f32 %v1773_v58, %v638_v35  ;;  %v751_v43 = vpop.f32.mrf.mxu1 }
 0x2a2   : > { %1206 = vpow2.f32 %v686_v39  ;;  %v674_v54 = vmul.f32 1.442695, %v649_v47  ;;  %v647_v55 = vsub.f32 %v1793_v7, %v638_v35  ;;  %v672_v56 = vmul.f32 1.442695, %v648_v48 }
 0x2a3   : > { %1208 = vpow2.f32 %v684_v40  ;;  %v642_v57 = vsub.f32 %v1782_v62, %v638_v35  ;;  %v646_v59 = vsub.f32 %v1795_v9, %v638_v35  ;;  %v658_v61 = vmul.f32 1.442695, %v641_v51 }
 0x2a4   : > { %1210 = vpow2.f32 %v682_v42  ;;  %v643_v58 = vsub.f32 %v1787_v1, %v638_v35  ;;  %v656_v63 = vmul.f32 1.442695, %v640_v52  ;;  %v670_v2 = vmul.f32 1.442695, %v647_v55  ;;  %v709_v42 = vpop.permute.xlu2 %708 }
 0x2a5   : > { %1212 = vpow2.f32 %v680_v44  ;;  %v645_v4 = vsub.f32 %v1791_v5, %v638_v35  ;;  %v644_v62 = vsub.f32 %v1789_v3, %v638_v35  ;;  %v660_v6 = vmul.f32 1.442695, %v642_v57 }
 0x2a6   : > { %1214 = vpow2.f32 %v678_v46  ;;  %v668_v8 = vmul.f32 1.442695, %v646_v59  ;;  %v662_v9 = vmul.f32 1.442695, %v643_v58  ;;  %v749_v38 = vadd.f32 %v748_v31, %v704_v36 }
 0x2a7   : > { %1216 = vpow2.f32 %v676_v50  ;;  %v666_v1 = vmul.f32 1.442695, %v645_v4  ;;  %v664_v11 = vmul.f32 1.442695, %v644_v62  ;;  %v634_v40 = vsub.f32 %v1806_v32, %v1809_v34  ;;  %v757_v34 = vld [vmem:[#allocation4] sm:$0x1] }
 0x2a8   : > { %v1814_v49 = vpop.eup %1206  ;;  %1218 = vpow2.f32 %v674_v54  ;;  %v752_v47 = vadd.f32 %v751_v43, %v709_v42 }
 0x2a9   : > { %793 = vmatpush.msra.mxu2 %v1814_v49  ;;  %v1819_v53 = vpop.eup %1208  ;;  %1220 = vpow2.f32 %v672_v56  ;;  %v635_v45 = vmul.f32 1.442695, %v634_v40  ;;  %v754_v54 = vpop.f32.mrf.mxu1 }
 0x2aa   : > { %v1824_v60 = vpop.eup %1210  ;;  %1222 = vpow2.f32 %v658_v61 }
 0x2ab   : > { %794 = vmatpush.msra.mxu2 %v1819_v53  ;;  %v1213_v0 = vpop.eup %1212  ;;  %1224 = vpow2.f32 %v656_v63 }
 0x2ac   : > { %v1215_v7 = vpop.eup %1214  ;;  %1226 = vpow2.f32 %v670_v2  ;;  %v714_v52 = vpop.permute.xlu2 %713  ;;  %v783_v2 = vld [vmem:[#allocation5 + $0x18] sm:$0xff] }
 0x2ad   : > { %795 = vmatpush.msra.mxu2 %v1824_v60  ;;  %v1217_v10 = vpop.eup %1216  ;;  %1228 = vpow2.f32 %v660_v6  ;;  %v755_v57 = vadd.f32 %v754_v54, %v714_v52 }
 0x2ae   : > { %v1219_v12 = vpop.eup %1218  ;;  %1230 = vpow2.f32 %v668_v8 }
 0x2af   : > { %796 = vmatpush.msra.mxu2 %v1213_v0  ;;  %v1221_v5 = vpop.eup %1220  ;;  %1232 = vpow2.f32 %v662_v9 }
 0x2b0   : > { %v1223_v13 = vpop.eup %1222  ;;  %1234 = vpow2.f32 %v666_v1  ;;  %v785_v1 = vld [vmem:[#allocation5 + $0x10] sm:$0xff] }
 0x2b1   : > { %797 = vmatpush.msra.mxu2 %v1215_v7  ;;  %v1225_v3 = vpop.eup %1224  ;;  %1236 = vpow2.f32 %v664_v11 }
 0x2b2   : > { %v1227_v14 = vpop.eup %1226  ;;  %v759_v15 = vadd.f32 %v1225_v3, %v1223_v13  ;;  %1238 = vpow2.f32 %v635_v45 }
 0x2b3   : > { %798 = vmatpush.msra.mxu2 %v1217_v10  ;;  %v1229_v16 = vpop.eup %1228 }
 0x2b4   : > { %v1231_v17 = vpop.eup %1230  ;;  %v760_v18 = vadd.f32 %v1229_v16, %v759_v15 }
 0x2b5   : > { %799 = vmatpush.msra.mxu2 %v1219_v12  ;;  %v1233_v19 = vpop.eup %1232 }
 0x2b6   : > { %v1235_v20 = vpop.eup %1234  ;;  %v761_v21 = vadd.f32 %v1233_v19, %v760_v18 }
 0x2b7   : > { %800 = vmatpush.msra.mxu2 %v1221_v5  ;;  %v1237_v22 = vpop.eup %1236 }
 0x2b8   : > { %v762_v24 = vadd.f32 %v1237_v22, %v761_v21  ;;  %v1239_v32 = vpop.eup %1238 }
 0x2b9   : > { %801 = vmatpush.msra.mxu2 %v1227_v14  ;;  %v787_v61 = vperm.slane %v1239_v32, 0 }
 0x2ba   : > { %v763_v25 = vadd.f32 %v1235_v20, %v762_v24 }
 0x2bb   : > { %802 = vmatpush.msra.mxu2 %v1231_v17  ;;  %v790_v4 = vmul.f32 %v787_v61, %v783_v2  ;;  %v792_v11 = vmul.f32 %v787_v61, %v785_v1 }
 0x2bc   : > { %v764_v27 = vadd.f32 %v1231_v17, %v763_v25 }
 0x2bd   : > { %803 = vmatpush.msra.mxu2 %v1235_v20 }
 0x2be   : > { %v765_v29 = vadd.f32 %v1227_v14, %v764_v27 }
 0x2bf   : > { %804 = vmatpush.msra.mxu2 %v1237_v22 }
 0x2c0   : > { %v766_v30 = vadd.f32 %v1221_v5, %v765_v29 }
 0x2c1   : > { %805 = vmatpush.msra.mxu2 %v1233_v19 }
 0x2c2   : > { %v767_v33 = vadd.f32 %v1219_v12, %v766_v30 }
 0x2c3   : > { %806 = vmatpush.msra.mxu2 %v1229_v16 }
 0x2c4   : > { %v768_v35 = vadd.f32 %v1217_v10, %v767_v33 }
 0x2c5   : > { %807 = vmatpush.msra.mxu2 %v1223_v13 }
 0x2c6   : > { %v769_v37 = vadd.f32 %v1215_v7, %v768_v35  ;;  %v784_v7 = vld [vmem:[#allocation5 + $0x8] sm:$0xff] }
 0x2c7   : > { %808 = vmatpush.msra.mxu2 %v1225_v3  ;;  %v791_v8 = vmul.f32 %v787_v61, %v784_v7 }
 0x2c8   : > { %809 = vmatmul.f32.vlgmr.msra.gmra.mxu2 %v746_v28  ;;  %v770_v39 = vadd.f32 %v1213_v0, %v769_v37 }
 0x2ca   : > { %v771_v41 = vadd.f32 %v1824_v60, %v770_v39  ;;  %v758_v60 = vmul.f32 %v1239_v32, %v757_v34 }
 0x2cc   : > { %v772_v44 = vadd.f32 %v1819_v53, %v771_v41 }
 0x2ce   : > { %v773_v46 = vadd.f32 %v1814_v49, %v772_v44  ;;  %v782_v49 = vld [vmem:[#allocation5] sm:$0xff] }
 0x2cf   : > { %v789_v58 = vmul.f32 %v787_v61, %v782_v49 }
 0x2d0   : > { %812 = vmatmul.f32.gmra.mxu2 %v749_v38  ;;  %v774_v48 = vrot.slane %v773_v46, 4 }
 0x2d2   : > { %v775_v50 = vadd.f32 %v774_v48, %v773_v46 }
 0x2d4   : > { %v776_v51 = vrot.slane %v775_v50, 2 }
 0x2d6   : > { %v777_v55 = vadd.f32 %v776_v51, %v775_v50 }
 0x2d8   : > { %815 = vmatmul.f32.gmra.mxu2 %v752_v47  ;;  %v778_v56 = vrot.slane %v777_v55, 1 }
 0x2da   : > { %v779_v59 = vadd.f32 %v778_v56, %v777_v55 }
 0x2dc   : > { %v780_v53 = vadd.f32 %v779_v59, %v758_v60 }
 0x2de   : > { %781 = vst [vmem:[#allocation4] sm:$0x1] %v780_v53 }
 0x2e0   : > { %818 = vmatmul.f32.gmra.mxu2 %v755_v57 }
 0x34b   : > { %v810_v63 = vpop.f32.mrf.mxu2 }
 0x34c   : > { %v822_v0 = vadd.f32 %v810_v63, %v789_v58 }
 0x34e   : > { %826 = vst [vmem:[#allocation5] sm:$0xff] %v822_v0 }
 0x353   : > { %v813_v62 = vpop.f32.mrf.mxu2 }
 0x354   : > { %v823_v6 = vadd.f32 %v813_v62, %v790_v4 }
 0x356   : > { %827 = vst [vmem:[#allocation5 + $0x18] sm:$0xff] %v823_v6 }
 0x35b   : > { %v816_v9 = vpop.f32.mrf.mxu2 }
 0x35c   : > { %v824_v10 = vadd.f32 %v816_v9, %v791_v8 }
 0x35e   : > { %828 = vst [vmem:[#allocation5 + $0x8] sm:$0xff] %v824_v10 }
 0x362   : > { %834 = sbr.rel (%p1041_p7) target bundleno = 891 (0x37b), region = 64 }
 0x363   : > { %v819_v12 = vpop.f32.mrf.mxu2 }
 0x364   : > { %v825_v5 = vadd.f32 %v819_v12, %v792_v11 }
 0x366   : > { %829 = vst [vmem:[#allocation5 + $0x10] sm:$0xff] %v825_v5 }
 0x367   : > { %v835_v13 = vld [vmem:[#allocation4] sm:$0x1]  ;;  %v838_v3 = vld [vmem:[#allocation5] sm:$0xff]  ;;  %v840_v16 = vld [vmem:[#allocation5 + $0x8] sm:$0xff]  ;;  %v849_v19 = vstv %s837_s18 }
 0x368   : > { %1240 = vrcp.f32 %v835_v13  ;;  %v839_v15 = vld [vmem:[#allocation5 + $0x18] sm:$0xff]  ;;  %v854_v24 = vld [vmem:[%s1687_s12] sm:$0xff]  ;;  %v855_v25 = vld [vmem:[%s1687_s12 + $0x8] sm:$0xff] }
 0x369   : > { %v856_v26 = vld [vmem:[%s1687_s12 + $0x10] sm:$0xff]  ;;  %v857_v31 = vld [vmem:[%s1687_s12 + $0x18] sm:$0xff] }
 0x36d   : > { %v841_v17 = vld [vmem:[#allocation5 + $0x10] sm:$0xff] }
 0x36e   : > { %v1241_v14 = vpop.eup %1240 }
 0x36f   : > { %v843_v18 = vperm.slane %v1241_v14, 0 }
 0x371   : > { %v845_v20 = vmul.f32 %v843_v18, %v838_v3  ;;  %v846_v21 = vmul.f32 %v843_v18, %v839_v15  ;;  %v847_v22 = vmul.f32 %v843_v18, %v840_v16  ;;  %v848_v23 = vmul.f32 %v843_v18, %v841_v17 }
 0x373   : > { %v850_v27 = vmul.f32 %v849_v19, %v845_v20  ;;  %v851_v28 = vmul.f32 %v849_v19, %v846_v21  ;;  %v852_v29 = vmul.f32 %v849_v19, %v847_v22  ;;  %v853_v30 = vmul.f32 %v849_v19, %v848_v23 }
 0x375   : > { %v858_v33 = vadd.f32 %v854_v24, %v850_v27  ;;  %v859_v35 = vadd.f32 %v855_v25, %v851_v28  ;;  %v860_v36 = vadd.f32 %v856_v26, %v852_v29  ;;  %v861_v37 = vadd.f32 %v857_v31, %v853_v30 }
 0x377   : > { %862 = vst [vmem:[%s1700_s17] sm:$0xff] %v858_v33 }
 0x378   : > { %863 = vst [vmem:[%s1700_s17 + $0x8] sm:$0xff] %v859_v35 }
 0x379   : > { %864 = vst [vmem:[%s1700_s17 + $0x10] sm:$0xff] %v860_v36 }
 0x37a   : > { %865 = vst [vmem:[%s1700_s17 + $0x18] sm:$0xff] %v861_v37 }
 0x37b PF: > { %s1973_s9 = sld [smem:[#allocation18_spill]]  ;;  %s880_s5 = sshll.u32 %s1700_s17, 4  ;;  %s881_s5 = int_to_ptr.vmem [resolvable:$true] %s880_s5 }
 0x37c   : > { %s1974_s7 = sld [smem:[#allocation17_spill]]  ;;  %s867_s24 = scalar_lea.sflag [#allocation9], %s1683_s10 }
 0x37d   : > { %s1976_s21 = sld [smem:[#allocation30_spill]] }
 0x381   : > { %s1043_s16 = sshll.u32 %s1973_s9, 3 }
 0x382   : > { %s877_s11 = sadd.s32 %s1974_s7, %s1043_s16 }
 0x383   : > { %s1044_s15 = sshll.u32 %s877_s11, 3  ;;  %s1322_s17 = scalar_lea.hbm %s1976_s21, 128 }
 0x384   : > { %s879_s22 = scalar_lea.hbm %s1976_s21, %s1044_s15 }
 0x385   : > { %s882_s6 = sshll.u32 %s879_s22, 4  ;;  %s883_s6 = int_to_ptr.hbm [resolvable:$true] %s882_s6 }
 0x386   : > { %s1316_s25 = sshra.s32 %s883_s6, 4  ;;  %s1317_s25 = int_to_ptr.hbm [resolvable:$true] %s1316_s25 }
 0x387   : > { %s1318_s18 = scalar_lea.hbm %s1317_s25, 32  ;;  %p1323_p6 = scmp.lt.s32.totalorder %s1317_s25, %s1976_s21 }
 0x388   : > { %p1319_p0 = scmp.ne.s32.totalorder %s1317_s25, %s1318_s18  ;;  %p1324_p11 = scmp.lt.s32.totalorder %s1322_s17, %s1318_s18 }
 0x38a   : > { %p1320_p4 = pnand %p1319_p0, %p1589_p8  ;;  %p1325_p12 = por %p1324_p11, %p1323_p6 }
 0x38c   : > { %p1321_p5 = pneg %p1320_p4 }
 0x38e   : > { %p1326_p3 = pnand %p1325_p12, %p1321_p5 }
 0x390   : > { %1329 = shalt.err (!%p1326_p3)
}
 0x391   : > { %s1453_s10 = smov 128   ;;  %s1454_s11 = smov 256  }
 0x392   : > { %s1455_s15 = smov 8  }
 0x393   : > { %1071 = dma.vmem_to_hbm [thread:$0]  (%p1589_p8), %s881_s5, 512, %s883_s6, %s867_s24, %s1453_s10, %s1454_s11, %s1455_s15  }
 0x394 PF: > { %s1977_s12 = sld [smem:[#allocation16_spill]]  ;;  %p1085_p1 = scmp.ge.s32.totalorder %s1444_s14, 2 }
 0x396   : > { %p1081_p13 = pnand %p1085_p1, %p1593_p9 }
 0x398   : > { %p1082_p2 = pneg %p1081_p13 }
 0x39a   : > { %s897_s0 = sand.u32 1, %s1977_s12  }
 0x39b   : > { %s898_s22 = scalar_lea.sflag [#allocation9], %s897_s0 }
 0x39c   : > { %1391 = dma.done.wait (%p1082_p2), %s898_s22, 512  }
 0x39d   : > { %1393 = vsyncadd (%p1082_p2), %s898_s22, 4294966784  ;;  %s27_s14 = sadd.s32 1, %s1444_s14   ;;  %s1980_s9 = sld [smem:[#allocation19_spill]] }
 0x39e   : > { %p1867_p10 = scmp.ge.s32.totalorder %s27_s14, 10   ;;  %s1981_s6 = sld [smem:[#allocation20_spill]] }
 0x39f   : > { %s1982_s11 = sld [smem:[#allocation23_spill]]  ;;  %s1984_s20 = smov %s2002_s26 }
 0x3a0   : > { %s1983_s12 = sld [smem:[#allocation24_spill]]  ;;  %s1985_s26 = smov %s1400_s27 }
 0x3a1   : > { %s1986_s27 = smov %s1404_s28  ;;  %s1987_s28 = smov %s1671_s2 }
 0x3a2   : > { %s1988_s29 = smov %s1412_s30  ;;  %s1989_s30 = smov %s1416_s8 }
 0x3a3   : > { %s1990_s8 = smov %s1666_s3  ;;  %s1991_s10 = smov %s1440_s13 }
 0x3a4   : > { %s1992_s13 = smov %s1984_s20  ;;  %26 = sbr.rel (!%p1867_p10) target bundleno = 20 (0x14), region = 114 }
 0x3a9   :  { %904 = vsyncpa [#allocation8], 1 }
 0x3aa   :  { %906 = vsyncpa [#allocation8 + $0x1], 1 }
 0x3ab   :  { %907 = vsyncpa [#allocation11], 1 }
 0x3ac   :  { %909 = vsyncpa [#allocation11 + $0x1], 1 }
 0x3ad   :  { %910 = vsyncpa [#allocation9], 1 }
 0x3ae   :  { %912 = vsyncpa [#allocation9 + $0x1], 1 }

</bundles_post_ra>
